<compile_context>
chip_gen: v7x
topology: tpu7x:2x2x1
jax: 0.10.0
libtpu: 0.0.40
codegen_flags: <defaults>
</compile_context>

<pallas_src>
import functools

import jax
import jax.numpy as jnp
from jax.experimental import pallas as pl
from jax.experimental.pallas import tpu as pltpu

_LANES = 128


def _wave_kernel(x_ref, o_ref, *, a, compute_dtype):
    z = x_ref[...].astype(compute_dtype)
    z2 = z * z
    o_ref[...] = (1 - z2 * jnp.exp((-a) * z2)).astype(o_ref.dtype)


def _wave_jnp(x, a):
    """Plain-jnp fallback for tiny tails (< 128 elements)."""
    cd = jnp.bfloat16 if x.dtype == jnp.bfloat16 else jnp.float32
    z = x.astype(cd)
    z2 = z * z
    return (1 - z2 * jnp.exp((-float(a)) * z2)).astype(x.dtype)


def _choose_block_rows(rows, itemsize, sub_mult, target_bytes=2 << 20):
    """Byte-budget block sizing with a minimum grid-step count for megacore."""
    br = max(sub_mult, target_bytes // (_LANES * itemsize))
    br = (br // sub_mult) * sub_mult

    total_bytes = rows * _LANES * itemsize
    if total_bytes >= (2 << 20):
        # Keep blocks >= ~1 MiB but guarantee several steps for 2-TC sharding.
        desired_steps = min(8, total_bytes // (1 << 20))
    elif total_bytes >= (512 << 10):
        desired_steps = 2
    else:
        desired_steps = 1

    if desired_steps > 1:
        cap = -(-rows // desired_steps)                  # cdiv
        cap = max(sub_mult, -(-cap // sub_mult) * sub_mult)
        br = min(br, cap)
    return br


def _wave_2d(x2d, a, block_rows=None):
    rows, lanes = x2d.shape
    assert lanes == _LANES
    itemsize = x2d.dtype.itemsize
    compute_dtype = jnp.bfloat16 if x2d.dtype == jnp.bfloat16 else jnp.float32
    packing = max(1, 4 // itemsize)       # f32 -> 1, bf16 -> 2, int8/fp8 -> 4
    sub_mult = 8 * packing                # sublane-packing multiple

    if block_rows is None:
        br = _choose_block_rows(rows, itemsize, sub_mult)
    else:
        br = int(block_rows)

    if br >= rows:
        br = rows                         # full-extent block: always legal
    elif br % sub_mult != 0:
        br = max(sub_mult, (br // sub_mult) * sub_mult)

    num_steps = -(-rows // br)            # cdiv; trailing partial block masked
    block_bytes = br * _LANES * itemsize

    kernel = functools.partial(_wave_kernel, a=float(a),
                               compute_dtype=compute_dtype)

    # Triple-buffer the input when blocks are small and the grid is long.
    use_triple = (block_bytes < (1 << 20)) and (num_steps >= 4)
    in_spec = pl.BlockSpec((br, _LANES), lambda i: (i, 0))
    n_in_buf = 2
    if use_triple:
        try:
            in_spec = pl.BlockSpec((br, _LANES), lambda i: (i, 0),
                                   pipeline_mode=pl.Buffered(3))
            n_in_buf = 3
        except TypeError:
            pass  # older BlockSpec signature: fall back to double buffering

    # Explicit scoped-VMEM budget with headroom; well under every gen's
    # physical VMEM (v5e/v6e 128 MiB, v7x 64 MiB).
    vmem_limit = int(min(max((n_in_buf + 2) * block_bytes * 2, 4 << 20),
                         32 << 20))

    n_elems = rows * _LANES
    cost = pl.CostEstimate(
        flops=5 * n_elems,
        transcendentals=n_elems,
        bytes_accessed=2 * n_elems * itemsize,
    )

    return pl.pallas_call(
        kernel,
        out_shape=jax.ShapeDtypeStruct((rows, _LANES), x2d.dtype),
        grid=(num_steps,),
        in_specs=[in_spec],
        out_specs=pl.BlockSpec((br, _LANES), lambda i: (i, 0)),
        compiler_params=pltpu.CompilerParams(
            dimension_semantics=("parallel",),
            vmem_limit_bytes=vmem_limit,
        ),
        cost_estimate=cost,
    )(x2d)


def wave(x, a=1.0, *, block_rows=None):
    """Applies Wave(z) = 1 - z^2 * exp(-a * z^2) elementwise (any shape)."""
    orig_shape = x.shape
    n = x.size
    if n == 0:
        return x

    x_flat = jnp.ravel(x)                 # free: contiguous reshape
    n_main = (n // _LANES) * _LANES
    tail = n - n_main

    if n_main == 0:
        # Entire tensor is smaller than one lane row; not worth a kernel.
        return _wave_jnp(x_flat, a).reshape(orig_shape)

    main = x_flat if tail == 0 else x_flat[:n_main]
    rows = n_main // _LANES
    out2d = _wave_2d(main.reshape(rows, _LANES), a, block_rows)

    if tail == 0:
        return out2d.reshape(orig_shape)

    # Ragged tail (< 128 elements): tiny jnp computation, no full-tensor pad.
    tail_out = _wave_jnp(x_flat[n_main:], a)
    return jnp.concatenate([out2d.reshape(-1), tail_out]).reshape(orig_shape)


def wave_ref(x, a=1.0):
    z = x.astype(jnp.float32)
    z2 = z * z
    return (1.0 - z2 * jnp.exp(-a * z2)).astype(x.dtype)


if __name__ == "__main__":
    key = jax.random.PRNGKey(0)

    # 1) Main test: NCHW activation tensor, flat size multiple of 128
    #    -> single full-extent block, zero wrapper-side HBM passes.
    x = jax.random.normal(key, (2, 4, 16, 16), dtype=jnp.float32)
    out = jax.block_until_ready(wave(x, a=1.0))
    ref = wave_ref(x, a=1.0)
    assert out.shape == x.shape and out.dtype == x.dtype
    assert jnp.allclose(out, ref, atol=1e-5, rtol=1e-5)

    # 2) Partial trailing block (rows=20, block_rows=8 -> grid=3, masked store).
    x2 = jax.random.normal(jax.random.PRNGKey(1), (2, 4, 20, 16),
                           dtype=jnp.float32)
    out2 = jax.block_until_ready(wave(x2, a=0.5, block_rows=8))
    assert jnp.allclose(out2, wave_ref(x2, a=0.5), atol=1e-5, rtol=1e-5)

    # 3) Ragged size with aligned prefix + <128-element tail (no full pad).
    x3 = jax.random.normal(jax.random.PRNGKey(2), (2, 3, 97),
                           dtype=jnp.float32)
    out3 = jax.block_until_ready(wave(x3, a=2.0))
    assert out3.shape == x3.shape
    assert jnp.allclose(out3, wave_ref(x3, a=2.0), atol=1e-5, rtol=1e-5)

    # 4) Tiny ragged tensor (< 128 elements) -> pure jnp path.
    x4 = jax.random.normal(jax.random.PRNGKey(3), (3, 5, 7),
                           dtype=jnp.float32)
    out4 = jax.block_until_ready(wave(x4, a=2.0))
    assert jnp.allclose(out4, wave_ref(x4, a=2.0), atol=1e-5, rtol=1e-5)

    # 5) bf16 path: bf16 compute (bf16 VPU/EUP on v6e/v7x), 16-row packing.
    x5 = jax.random.normal(jax.random.PRNGKey(4), (2, 4, 16, 16),
                           dtype=jnp.bfloat16)
    out5 = jax.block_until_ready(wave(x5, a=1.0))
    assert out5.dtype == jnp.bfloat16
    assert jnp.allclose(out5.astype(jnp.float32),
                        wave_ref(x5.astype(jnp.float32), a=1.0),
                        atol=3e-2, rtol=3e-2)

    # 6) Small-block / long-grid path: exercises triple-buffered input specs.
    x6 = jax.random.normal(jax.random.PRNGKey(5), (2, 4, 32, 128),
                           dtype=jnp.float32)
    out6 = jax.block_until_ready(wave(x6, a=1.5, block_rows=32))
    assert jnp.allclose(out6, wave_ref(x6, a=1.5), atol=1e-5, rtol=1e-5)

    print("KERNEL_OK")
</pallas_src>

<mosaic_0001>
module attributes {stable_mosaic.version = 11 : i64} {
  func.func @_wave_kernel(%arg0: i32, %arg1: memref<16x128xf32, #tpu.memory_space<vmem>>, %arg2: memref<16x128xf32, #tpu.memory_space<vmem>>) attributes {dimension_semantics = [#tpu.dimension_semantics<parallel>], iteration_bounds = array<i64: 1>, scalar_prefetch = 0 : i64, scratch_operands = 0 : i64, tpu.core_type = #tpu.core_type<tc>, window_params = [{transform_indices = @transform_0, window_bounds = array<i64: 16, 128>}, {transform_indices = @transform_1, window_bounds = array<i64: 16, 128>}]} {
    %c0 = arith.constant 0 : index
    %c0_0 = arith.constant 0 : index
    %0 = vector.load %arg1[%c0, %c0_0] : memref<16x128xf32, #tpu.memory_space<vmem>>, vector<16x128xf32>
    %1 = arith.mulf %0, %0 : vector<16x128xf32>
    %cst = arith.constant -1.000000e+00 : f32
    %2 = vector.broadcast %cst : f32 to vector<16x128xf32>
    %3 = arith.mulf %2, %1 : vector<16x128xf32>
    %4 = math.exp %3 : vector<16x128xf32>
    %5 = arith.mulf %1, %4 : vector<16x128xf32>
    %cst_1 = arith.constant 1.000000e+00 : f32
    %6 = vector.broadcast %cst_1 : f32 to vector<16x128xf32>
    %7 = arith.subf %6, %5 : vector<16x128xf32>
    %c0_2 = arith.constant 0 : index
    %c0_3 = arith.constant 0 : index
    %8 = vector.load %arg2[%c0_2, %c0_3] : memref<16x128xf32, #tpu.memory_space<vmem>>, vector<16x128xf32>
    tpu.vector_store %arg2[%c0_2, %c0_3], %7 {strides = array<i32>} : memref<16x128xf32, #tpu.memory_space<vmem>>, vector<16x128xf32>,
    return
  }
  func.func @transform_0(%arg0: i32) -> (i32, i32) {
    %c0_i32 = arith.constant 0 : i32
    %c0_i32_0 = arith.constant 0 : i32
    return %arg0, %c0_i32 : i32, i32
  }
  func.func @transform_1(%arg0: i32) -> (i32, i32) {
    %c0_i32 = arith.constant 0 : i32
    %c0_i32_0 = arith.constant 0 : i32
    return %arg0, %c0_i32 : i32, i32
  }
}

</mosaic_0001>

<bundles_post_ra>
// kernel: tpu_custom_call.1
= control target key start
LH: loop header
LB: loop body
LE: loop exit
PB: predicated region body
PF: predicated region fallthrough
CT: control target
= control target key end

     0   :  { %6 = vsyncpa [#allocation3], 0  ;;  %s156_s0 = inlined_call_operand.hbm [shape: f32[16,128], index: 0, kind: input, shape index: {}]   ;;  %s157_s1 = inlined_call_operand.hbm [shape: f32[16,128], index: 1, kind: output, shape index: {}]  }
   0x1   :  { %7 = vsyncpa [#allocation4], 0  ;;  %s112_s6 = smov [#allocation2]   ;;  %s64_s10 = scalar_lea.hbm %s156_s0, 256 }
   0x2   :  { %s13_s7 = sshll.u32 %s112_s6, 4  ;;  %p65_p0 = scmp.ne.s32.totalorder %s156_s0, %s64_s10  ;;  %s14_s7 = int_to_ptr.vmem [resolvable:$true] %s13_s7 }
   0x3   :  { %p68_p1 = scmp.lt.u32.totalorder %s64_s10, %s156_s0 }
   0x5   :  { %p70_p2 = pnand %p68_p1, %p65_p0 }
   0x7   :  { %73 = shalt.err (!%p70_p2)
}
   0x8   :  { %s74_s15 = scalar_lea.vmem %s14_s7, 256  ;;  %p79_p4 = scmp.lt.s32.totalorder %s14_s7, %s14_s7 }
   0x9   :  { %p75_p3 = scmp.ne.s32.totalorder %s14_s7, %s74_s15  ;;  %p80_p5 = scmp.lt.s32.totalorder %s74_s15, %s74_s15 }
   0xb   :  { %p81_p6 = por %p80_p5, %p79_p4 }
   0xd   :  { %p82_p7 = pnand %p81_p6, %p75_p3 }
   0xf   :  { %85 = shalt.err (!%p82_p7)
}
  0x10   :  { %s113_s16 = smov 128   ;;  %s114_s17 = smov 8  }
  0x11   :  { %19 = dma.hbm_to_vmem [thread:$0]  %s156_s0, 256, %s14_s7, [#allocation3], %s113_s16, %s113_s16, %s114_s17  }
  0x12   :  { %108 = dma.done.wait [#allocation3], 256  }
  0x13   :  { %109 = vsyncadd [#allocation3], 4294967040  ;;  %v23_v0 = vld [vmem:[#allocation2] sm:$0xff]  ;;  %v24_v1 = vld [vmem:[#allocation2 + $0x8] sm:$0xff]  ;;  %s115_s20 = smov [#allocation5]  }
  0x14   :  { %v25_v2 = vmul.f32 %v23_v0, %v23_v0  ;;  %v26_v3 = vmul.f32 %v24_v1, %v24_v1  ;;  %s44_s21 = sshll.u32 %s115_s20, 4  ;;  %s45_s21 = int_to_ptr.vmem [resolvable:$true] %s44_s21 }
  0x15   :  { %s86_s0 = scalar_lea.vmem %s45_s21, 256  ;;  %p91_p9 = scmp.lt.s32.totalorder %s45_s21, %s45_s21 }
  0x16   :  { %v27_v4 = vmul.f32 -1.0, %v25_v2  ;;  %v28_v5 = vmul.f32 -1.0, %v26_v3  ;;  %p87_p8 = scmp.ne.s32.totalorder %s45_s21, %s86_s0  ;;  %p92_p10 = scmp.lt.s32.totalorder %s86_s0, %s86_s0 }
  0x18   :  { %v29_v6 = vmul.f32 1.442695, %v27_v4  ;;  %v31_v7 = vmul.f32 1.442695, %v28_v5  ;;  %p93_p11 = por %p92_p10, %p91_p9 }
  0x1a   :  { %60 = vpow2.f32 %v29_v6  ;;  %p94_p12 = pnand %p93_p11, %p87_p8 }
  0x1b   :  { %62 = vpow2.f32 %v31_v7 }
  0x24   :  { %v61_v8 = vpop.eup %60 }
  0x25   :  { %v63_v9 = vpop.eup %62  ;;  %v33_v10 = vmul.f32 %v61_v8, %v25_v2 }
  0x26   :  { %v34_v11 = vmul.f32 %v63_v9, %v26_v3 }
  0x27   :  { %v35_v12 = vsub.f32 1.0, %v33_v10 }
  0x28   :  { %v36_v13 = vsub.f32 1.0, %v34_v11 }
  0x29   :  { %37 = vst [vmem:[#allocation5] sm:$0xff] %v35_v12 }
  0x2a   :  { %38 = vst [vmem:[#allocation5 + $0x8] sm:$0xff] %v36_v13 }
  0x2b   :  { %97 = shalt.err (!%p94_p12)
}
  0x2c   :  { %s98_s24 = scalar_lea.hbm %s157_s1, 256 }
  0x2d   :  { %p99_p13 = scmp.ne.s32.totalorder %s157_s1, %s98_s24  ;;  %p102_p0 = scmp.lt.u32.totalorder %s98_s24, %s157_s1 }
  0x2f   :  { %p104_p1 = pnand %p102_p0, %p99_p13 }
  0x31   :  { %107 = shalt.err (!%p104_p1)
}
  0x32   :  { %50 = dma.vmem_to_hbm [thread:$0]  %s45_s21, 256, %s157_s1, [#allocation4], %s113_s16, %s113_s16, %s114_s17  }
  0x33   :  { %110 = dma.done.wait [#allocation4], 256  }
  0x34   :  { %111 = vsyncadd [#allocation4], 4294967040 }
  0x35   :  { %54 = vsyncpa [#allocation3], 1 }
  0x36   :  { %55 = vsyncpa [#allocation4], 1 }

</bundles_post_ra>
